<compile_context>
chip_gen: v5e
topology: v5e:2x2
jax: 0.10.0
libtpu: 0.0.40
codegen_flags: <defaults>
</compile_context>

<pallas_src>
import jax
import jax.numpy as jnp
from jax import lax
from jax.experimental import pallas as pl
from jax.experimental.pallas import tpu as pltpu

POOL = 4  # nn.AvgPool2d(4)


# ---------------------------------------------------------------------------
# Constant pooling / shift matrices (built once, on device, in the wrapper)
# ---------------------------------------------------------------------------
def _pool_and_shift_mats(H, W):
    Hp, Wp = H // POOL, W // POOL
    f32 = jnp.float32
    # Pw: (W, Wp), Pw[k, j] = 1/4  iff  k // 4 == j       (x @ Pw pools columns)
    kw = lax.broadcasted_iota(jnp.int32, (W, Wp), 0)
    jw = lax.broadcasted_iota(jnp.int32, (W, Wp), 1)
    pw = jnp.where(kw // POOL == jw, 1.0 / POOL, 0.0).astype(f32)
    # Ph: (Hp, H), Ph[i, k] = 1/4  iff  k // 4 == i       (Ph @ x pools rows)
    ih = lax.broadcasted_iota(jnp.int32, (Hp, H), 0)
    kh = lax.broadcasted_iota(jnp.int32, (Hp, H), 1)
    ph = jnp.where(kh // POOL == ih, 1.0 / POOL, 0.0).astype(f32)
    # Lane (width) shift matrices, zero boundary implicit:
    rc = lax.broadcasted_iota(jnp.int32, (Wp, Wp), 0)
    cc = lax.broadcasted_iota(jnp.int32, (Wp, Wp), 1)
    ml = jnp.where(rc == cc - 1, 1.0, 0.0).astype(f32)    # (x@Ml)[:, j] = x[:, j-1]
    mr = jnp.where(rc == cc + 1, 1.0, 0.0).astype(f32)    # (x@Mr)[:, j] = x[:, j+1]
    # Sublane (height) shift matrices:
    rr = lax.broadcasted_iota(jnp.int32, (Hp, Hp), 0)
    cr = lax.broadcasted_iota(jnp.int32, (Hp, Hp), 1)
    mu = jnp.where(cr == rr - 1, 1.0, 0.0).astype(f32)    # (Mu@x)[i, :] = x[i-1, :]
    md = jnp.where(cr == rr + 1, 1.0, 0.0).astype(f32)    # (Md@x)[i, :] = x[i+1, :]
    return pw, ph, ml, mr, mu, md


# ---------------------------------------------------------------------------
# Fused kernel: one block of `bt` batch elements per grid step
# ---------------------------------------------------------------------------
def _l_spa_kernel(org_ref, enh_ref, pw_ref, ph_ref, ml_ref, mr_ref,
                  mu_ref, md_ref, e_ref):
    bt, C, H, W = org_ref.shape
    f32 = jnp.float32

    # Constants are loaded once (resident in VMEM across the whole grid).
    pw = pw_ref[...]
    ph = ph_ref[...]
    ml = ml_ref[...]
    mr = mr_ref[...]
    mu = mu_ref[...]
    md = md_ref[...]

    for b in range(bt):  # static unroll over the packed batch slice
        # Linearity: work on (org - enhance) once. Cast to f32 after the
        # native-dtype load.
        diff = org_ref[b].astype(f32) - enh_ref[b].astype(f32)   # (C, H, W)
        m = jnp.mean(diff, axis=0)                               # (H, W)

        # 4x4 average pool == Ph @ m @ Pw (two small MXU matmuls); contract
        # the larger spatial dimension first.
        if W >= H:
            t = jnp.dot(m, pw, preferred_element_type=f32)       # (H, Wp)
            p = jnp.dot(ph, t, preferred_element_type=f32)       # (Hp, Wp)
        else:
            t = jnp.dot(ph, m, preferred_element_type=f32)       # (Hp, W)
            p = jnp.dot(t, pw, preferred_element_type=f32)       # (Hp, Wp)

        # Directional 3x3 convs (padding=1) == differences with zero-padded
        # one-pixel shifts, realized with tiny constant shift matrices.
        d_l = p - jnp.dot(p, ml, preferred_element_type=f32)     # left
        d_r = p - jnp.dot(p, mr, preferred_element_type=f32)     # right
        d_u = p - jnp.dot(mu, p, preferred_element_type=f32)     # up
        d_d = p - jnp.dot(md, p, preferred_element_type=f32)     # down

        e_ref[b, 0] = d_l * d_l + d_r * d_r + d_u * d_u + d_d * d_d


# ---------------------------------------------------------------------------
# Wrapper
# ---------------------------------------------------------------------------
def _pick_batch_block(N, C, H, W, itemsize, budget_bytes, max_bt=4):
    """Largest divisor of N (<= max_bt) whose per-step footprint fits."""
    best = 1
    for bt in range(1, min(N, max_bt) + 1):
        if N % bt:
            continue
        need = _step_bytes(bt, C, H, W, itemsize)
        if need <= budget_bytes:
            best = bt
    return best


def _step_bytes(bt, C, H, W, itemsize):
    # 2 inputs x 2 pipeline buffers x block bytes  +  f32 intermediates
    return 4 * bt * C * H * W * itemsize + (C + 4) * H * W * 4


def l_spa(org, enhance):
    """L_spa.forward(org, enhance) -> E of shape (N, 1, H//4, W//4)."""
    assert org.ndim == 4 and enhance.shape == org.shape
    N, C, H, W = org.shape
    Hp, Wp = H // POOL, W // POOL

    pw, ph, ml, mr, mu, md = _pool_and_shift_mats(H, W)

    itemsize = jnp.dtype(org.dtype).itemsize
    bt = _pick_batch_block(N, C, H, W, itemsize, budget_bytes=28 * 1024 * 1024)
    need = _step_bytes(bt, C, H, W, itemsize) + 4 * 1024 * 1024
    vmem_limit = int(min(max(need, 32 * 1024 * 1024), 64 * 1024 * 1024))

    def const_spec(shape):
        return pl.BlockSpec(shape, lambda n: (0, 0))

    return pl.pallas_call(
        _l_spa_kernel,
        out_shape=jax.ShapeDtypeStruct((N, 1, Hp, Wp), jnp.float32),
        grid=(N // bt,),
        in_specs=[
            pl.BlockSpec((bt, C, H, W), lambda n: (n, 0, 0, 0)),
            pl.BlockSpec((bt, C, H, W), lambda n: (n, 0, 0, 0)),
            const_spec((W, Wp)),
            const_spec((Hp, H)),
            const_spec((Wp, Wp)),
            const_spec((Wp, Wp)),
            const_spec((Hp, Hp)),
            const_spec((Hp, Hp)),
        ],
        out_specs=pl.BlockSpec((bt, 1, Hp, Wp), lambda n: (n, 0, 0, 0)),
        compiler_params=pltpu.CompilerParams(
            dimension_semantics=("parallel",),
            vmem_limit_bytes=vmem_limit,
        ),
    )(org, enhance, pw, ph, ml, mr, mu, md)


# ---------------------------------------------------------------------------
# Pure-JAX reference (mirrors the PyTorch forward with lax.conv / reduce_window)
# ---------------------------------------------------------------------------
def reference_l_spa(org, enhance):
    org_mean = jnp.mean(org, axis=1, keepdims=True)
    enh_mean = jnp.mean(enhance, axis=1, keepdims=True)

    def avg_pool4(x):
        s = lax.reduce_window(x, 0.0, lax.add, (1, 1, POOL, POOL),
                              (1, 1, POOL, POOL), "VALID")
        return s / float(POOL * POOL)

    org_pool = avg_pool4(org_mean)
    enh_pool = avg_pool4(enh_mean)

    def dconv(x, k):
        w = jnp.array(k, jnp.float32).reshape(1, 1, 3, 3)      # OIHW
        return lax.conv_general_dilated(
            x, w, window_strides=(1, 1), padding=[(1, 1), (1, 1)],
            dimension_numbers=("NCHW", "OIHW", "NCHW"))

    kernels = [
        [[0, 0, 0], [-1, 1, 0], [0, 0, 0]],   # left
        [[0, 0, 0], [0, 1, -1], [0, 0, 0]],   # right
        [[0, -1, 0], [0, 1, 0], [0, 0, 0]],   # up
        [[0, 0, 0], [0, 1, 0], [0, -1, 0]],   # down
    ]
    e = 0.0
    for k in kernels:
        d = dconv(org_pool, k) - dconv(enh_pool, k)
        e = e + d * d
    return e


if __name__ == "__main__":
    key = jax.random.PRNGKey(0)
    cases = [
        ((2, 3, 16, 16), jnp.float32),    # small square, whole batch in 1 step
        ((8, 3, 48, 32), jnp.float32),    # H > W (Ph-first branch), grid of 2
        ((4, 3, 32, 64), jnp.bfloat16),   # native-dtype DMA + in-kernel cast
    ]
    for idx, (shape, dtype) in enumerate(cases):
        k1, k2 = jax.random.split(jax.random.fold_in(key, idx))
        org_f32 = jax.random.uniform(k1, shape, dtype=jnp.float32)
        enh_f32 = jax.random.uniform(k2, shape, dtype=jnp.float32)
        org = org_f32.astype(dtype)
        enh = enh_f32.astype(dtype)

        out = jax.block_until_ready(l_spa(org, enh))
        N, _, H, W = shape
        assert out.shape == (N, 1, H // POOL, W // POOL), out.shape

        ref = reference_l_spa(org.astype(jnp.float32), enh.astype(jnp.float32))
        err = float(jnp.max(jnp.abs(out - ref)))
        assert err < 1e-4, f"case {idx}: max abs error too large: {err}"

    print("KERNEL_OK")
</pallas_src>

<mosaic_0001>
module attributes {stable_mosaic.version = 11 : i64} {
  func.func @_l_spa_kernel(%arg0: i32, %arg1: memref<2x3x16x16xf32, #tpu.memory_space<vmem>>, %arg2: memref<2x3x16x16xf32, #tpu.memory_space<vmem>>, %arg3: memref<16x4xf32, #tpu.memory_space<vmem>>, %arg4: memref<4x16xf32, #tpu.memory_space<vmem>>, %arg5: memref<4x4xf32, #tpu.memory_space<vmem>>, %arg6: memref<4x4xf32, #tpu.memory_space<vmem>>, %arg7: memref<4x4xf32, #tpu.memory_space<vmem>>, %arg8: memref<4x4xf32, #tpu.memory_space<vmem>>, %arg9: memref<2x1x4x4xf32, #tpu.memory_space<vmem>>) attributes {dimension_semantics = [#tpu.dimension_semantics<parallel>], iteration_bounds = array<i64: 1>, scalar_prefetch = 0 : i64, scratch_operands = 0 : i64, tpu.core_type = #tpu.core_type<tc>, window_params = [{transform_indices = @transform_0, window_bounds = array<i64: 2, 3, 16, 16>}, {transform_indices = @transform_1, window_bounds = array<i64: 2, 3, 16, 16>}, {pipeline_mode = #tpu.pipeline_mode<synchronous>, transform_indices = @transform_2, window_bounds = array<i64: 16, 4>}, {pipeline_mode = #tpu.pipeline_mode<synchronous>, transform_indices = @transform_3, window_bounds = array<i64: 4, 16>}, {pipeline_mode = #tpu.pipeline_mode<synchronous>, transform_indices = @transform_4, window_bounds = array<i64: 4, 4>}, {pipeline_mode = #tpu.pipeline_mode<synchronous>, transform_indices = @transform_5, window_bounds = array<i64: 4, 4>}, {pipeline_mode = #tpu.pipeline_mode<synchronous>, transform_indices = @transform_6, window_bounds = array<i64: 4, 4>}, {pipeline_mode = #tpu.pipeline_mode<synchronous>, transform_indices = @transform_7, window_bounds = array<i64: 4, 4>}, {transform_indices = @transform_8, window_bounds = array<i64: 2, 1, 4, 4>}]} {
    %c0 = arith.constant 0 : index
    %c0_0 = arith.constant 0 : index
    %0 = vector.load %arg3[%c0, %c0_0] : memref<16x4xf32, #tpu.memory_space<vmem>>, vector<16x4xf32>
    %c0_1 = arith.constant 0 : index
    %c0_2 = arith.constant 0 : index
    %1 = vector.load %arg4[%c0_1, %c0_2] : memref<4x16xf32, #tpu.memory_space<vmem>>, vector<4x16xf32>
    %c0_3 = arith.constant 0 : index
    %c0_4 = arith.constant 0 : index
    %2 = vector.load %arg5[%c0_3, %c0_4] : memref<4x4xf32, #tpu.memory_space<vmem>>, vector<4x4xf32>
    %c0_5 = arith.constant 0 : index
    %c0_6 = arith.constant 0 : index
    %3 = vector.load %arg6[%c0_5, %c0_6] : memref<4x4xf32, #tpu.memory_space<vmem>>, vector<4x4xf32>
    %c0_7 = arith.constant 0 : index
    %c0_8 = arith.constant 0 : index
    %4 = vector.load %arg7[%c0_7, %c0_8] : memref<4x4xf32, #tpu.memory_space<vmem>>, vector<4x4xf32>
    %c0_9 = arith.constant 0 : index
    %c0_10 = arith.constant 0 : index
    %5 = vector.load %arg8[%c0_9, %c0_10] : memref<4x4xf32, #tpu.memory_space<vmem>>, vector<4x4xf32>
    %c0_11 = arith.constant 0 : index
    %c0_12 = arith.constant 0 : index
    %c0_13 = arith.constant 0 : index
    %c0_14 = arith.constant 0 : index
    %6 = vector.load %arg1[%c0_11, %c0_12, %c0_13, %c0_14] : memref<2x3x16x16xf32, #tpu.memory_space<vmem>>, vector<1x3x16x16xf32>
    %7 = vector.shape_cast %6 : vector<1x3x16x16xf32> to vector<3x16x16xf32>
    %c0_15 = arith.constant 0 : index
    %c0_16 = arith.constant 0 : index
    %c0_17 = arith.constant 0 : index
    %c0_18 = arith.constant 0 : index
    %8 = vector.load %arg2[%c0_15, %c0_16, %c0_17, %c0_18] : memref<2x3x16x16xf32, #tpu.memory_space<vmem>>, vector<1x3x16x16xf32>
    %9 = vector.shape_cast %8 : vector<1x3x16x16xf32> to vector<3x16x16xf32>
    %10 = arith.subf %7, %9 : vector<3x16x16xf32>
    %cst = arith.constant dense<0.000000e+00> : vector<16x16xf32>
    %11 = vector.multi_reduction <add>, %10, %cst [0] : vector<3x16x16xf32> to vector<16x16xf32>
    %cst_19 = arith.constant 3.000000e+00 : f32
    %12 = vector.broadcast %cst_19 : f32 to vector<16x16xf32>
    %13 = arith.divf %11, %12 : vector<16x16xf32>
    %cst_20 = arith.constant dense<0.000000e+00> : vector<16x4xf32>
    %14 = tpu.matmul %13, %0, %cst_20 {dimension_numbers = #tpu.dot_dimension_numbers<[1], [0], [0], [1], [0, 0, 1, 1], [], []>} : vector<16x16xf32>, vector<16x4xf32>, vector<16x4xf32> -> vector<16x4xf32>
    %cst_21 = arith.constant dense<0.000000e+00> : vector<4x4xf32>
    %15 = tpu.matmul %1, %14, %cst_21 {dimension_numbers = #tpu.dot_dimension_numbers<[1], [0], [0], [1], [0, 0, 1, 1], [], []>} : vector<4x16xf32>, vector<16x4xf32>, vector<4x4xf32> -> vector<4x4xf32>
    %cst_22 = arith.constant dense<0.000000e+00> : vector<4x4xf32>
    %16 = tpu.matmul %15, %2, %cst_22 {dimension_numbers = #tpu.dot_dimension_numbers<[1], [0], [0], [1], [0, 0, 1, 1], [], []>} : vector<4x4xf32>, vector<4x4xf32>, vector<4x4xf32> -> vector<4x4xf32>
    %17 = arith.subf %15, %16 : vector<4x4xf32>
    %cst_23 = arith.constant dense<0.000000e+00> : vector<4x4xf32>
    %18 = tpu.matmul %15, %3, %cst_23 {dimension_numbers = #tpu.dot_dimension_numbers<[1], [0], [0], [1], [0, 0, 1, 1], [], []>} : vector<4x4xf32>, vector<4x4xf32>, vector<4x4xf32> -> vector<4x4xf32>
    %19 = arith.subf %15, %18 : vector<4x4xf32>
    %cst_24 = arith.constant dense<0.000000e+00> : vector<4x4xf32>
    %20 = tpu.matmul %4, %15, %cst_24 {dimension_numbers = #tpu.dot_dimension_numbers<[1], [0], [0], [1], [0, 0, 1, 1], [], []>} : vector<4x4xf32>, vector<4x4xf32>, vector<4x4xf32> -> vector<4x4xf32>
    %21 = arith.subf %15, %20 : vector<4x4xf32>
    %cst_25 = arith.constant dense<0.000000e+00> : vector<4x4xf32>
    %22 = tpu.matmul %5, %15, %cst_25 {dimension_numbers = #tpu.dot_dimension_numbers<[1], [0], [0], [1], [0, 0, 1, 1], [], []>} : vector<4x4xf32>, vector<4x4xf32>, vector<4x4xf32> -> vector<4x4xf32>
    %23 = arith.subf %15, %22 : vector<4x4xf32>
    %24 = arith.mulf %17, %17 : vector<4x4xf32>
    %25 = arith.mulf %19, %19 : vector<4x4xf32>
    %26 = arith.addf %24, %25 : vector<4x4xf32>
    %27 = arith.mulf %21, %21 : vector<4x4xf32>
    %28 = arith.addf %26, %27 : vector<4x4xf32>
    %29 = arith.mulf %23, %23 : vector<4x4xf32>
    %30 = arith.addf %28, %29 : vector<4x4xf32>
    %c0_26 = arith.constant 0 : index
    %c0_27 = arith.constant 0 : index
    %c0_28 = arith.constant 0 : index
    %c0_29 = arith.constant 0 : index
    %31 = vector.load %arg9[%c0_26, %c0_27, %c0_28, %c0_29] : memref<2x1x4x4xf32, #tpu.memory_space<vmem>>, vector<1x1x4x4xf32>
    %32 = vector.shape_cast %31 : vector<1x1x4x4xf32> to vector<4x4xf32>
    %33 = vector.shape_cast %30 : vector<4x4xf32> to vector<1x1x4x4xf32>
    tpu.vector_store %arg9[%c0_26, %c0_27, %c0_28, %c0_29], %33 {strides = array<i32>} : memref<2x1x4x4xf32, #tpu.memory_space<vmem>>, vector<1x1x4x4xf32>,
    %c1 = arith.constant 1 : index
    %c0_30 = arith.constant 0 : index
    %c0_31 = arith.constant 0 : index
    %c0_32 = arith.constant 0 : index
    %34 = vector.load %arg1[%c1, %c0_30, %c0_31, %c0_32] : memref<2x3x16x16xf32, #tpu.memory_space<vmem>>, vector<1x3x16x16xf32>
    %35 = vector.shape_cast %34 : vector<1x3x16x16xf32> to vector<3x16x16xf32>
    %c1_33 = arith.constant 1 : index
    %c0_34 = arith.constant 0 : index
    %c0_35 = arith.constant 0 : index
    %c0_36 = arith.constant 0 : index
    %36 = vector.load %arg2[%c1_33, %c0_34, %c0_35, %c0_36] : memref<2x3x16x16xf32, #tpu.memory_space<vmem>>, vector<1x3x16x16xf32>
    %37 = vector.shape_cast %36 : vector<1x3x16x16xf32> to vector<3x16x16xf32>
    %38 = arith.subf %35, %37 : vector<3x16x16xf32>
    %cst_37 = arith.constant dense<0.000000e+00> : vector<16x16xf32>
    %39 = vector.multi_reduction <add>, %38, %cst_37 [0] : vector<3x16x16xf32> to vector<16x16xf32>
    %cst_38 = arith.constant 3.000000e+00 : f32
    %40 = vector.broadcast %cst_38 : f32 to vector<16x16xf32>
    %41 = arith.divf %39, %40 : vector<16x16xf32>
    %cst_39 = arith.constant dense<0.000000e+00> : vector<16x4xf32>
    %42 = tpu.matmul %41, %0, %cst_39 {dimension_numbers = #tpu.dot_dimension_numbers<[1], [0], [0], [1], [0, 0, 1, 1], [], []>} : vector<16x16xf32>, vector<16x4xf32>, vector<16x4xf32> -> vector<16x4xf32>
    %cst_40 = arith.constant dense<0.000000e+00> : vector<4x4xf32>
    %43 = tpu.matmul %1, %42, %cst_40 {dimension_numbers = #tpu.dot_dimension_numbers<[1], [0], [0], [1], [0, 0, 1, 1], [], []>} : vector<4x16xf32>, vector<16x4xf32>, vector<4x4xf32> -> vector<4x4xf32>
    %cst_41 = arith.constant dense<0.000000e+00> : vector<4x4xf32>
    %44 = tpu.matmul %43, %2, %cst_41 {dimension_numbers = #tpu.dot_dimension_numbers<[1], [0], [0], [1], [0, 0, 1, 1], [], []>} : vector<4x4xf32>, vector<4x4xf32>, vector<4x4xf32> -> vector<4x4xf32>
    %45 = arith.subf %43, %44 : vector<4x4xf32>
    %cst_42 = arith.constant dense<0.000000e+00> : vector<4x4xf32>
    %46 = tpu.matmul %43, %3, %cst_42 {dimension_numbers = #tpu.dot_dimension_numbers<[1], [0], [0], [1], [0, 0, 1, 1], [], []>} : vector<4x4xf32>, vector<4x4xf32>, vector<4x4xf32> -> vector<4x4xf32>
    %47 = arith.subf %43, %46 : vector<4x4xf32>
    %cst_43 = arith.constant dense<0.000000e+00> : vector<4x4xf32>
    %48 = tpu.matmul %4, %43, %cst_43 {dimension_numbers = #tpu.dot_dimension_numbers<[1], [0], [0], [1], [0, 0, 1, 1], [], []>} : vector<4x4xf32>, vector<4x4xf32>, vector<4x4xf32> -> vector<4x4xf32>
    %49 = arith.subf %43, %48 : vector<4x4xf32>
    %cst_44 = arith.constant dense<0.000000e+00> : vector<4x4xf32>
    %50 = tpu.matmul %5, %43, %cst_44 {dimension_numbers = #tpu.dot_dimension_numbers<[1], [0], [0], [1], [0, 0, 1, 1], [], []>} : vector<4x4xf32>, vector<4x4xf32>, vector<4x4xf32> -> vector<4x4xf32>
    %51 = arith.subf %43, %50 : vector<4x4xf32>
    %52 = arith.mulf %45, %45 : vector<4x4xf32>
    %53 = arith.mulf %47, %47 : vector<4x4xf32>
    %54 = arith.addf %52, %53 : vector<4x4xf32>
    %55 = arith.mulf %49, %49 : vector<4x4xf32>
    %56 = arith.addf %54, %55 : vector<4x4xf32>
    %57 = arith.mulf %51, %51 : vector<4x4xf32>
    %58 = arith.addf %56, %57 : vector<4x4xf32>
    %c1_45 = arith.constant 1 : index
    %c0_46 = arith.constant 0 : index
    %c0_47 = arith.constant 0 : index
    %c0_48 = arith.constant 0 : index
    %59 = vector.load %arg9[%c1_45, %c0_46, %c0_47, %c0_48] : memref<2x1x4x4xf32, #tpu.memory_space<vmem>>, vector<1x1x4x4xf32>
    %60 = vector.shape_cast %59 : vector<1x1x4x4xf32> to vector<4x4xf32>
    %61 = vector.shape_cast %58 : vector<4x4xf32> to vector<1x1x4x4xf32>
    tpu.vector_store %arg9[%c1_45, %c0_46, %c0_47, %c0_48], %61 {strides = array<i32>} : memref<2x1x4x4xf32, #tpu.memory_space<vmem>>, vector<1x1x4x4xf32>,
    return
  }
  func.func @transform_0(%arg0: i32) -> (i32, i32, i32, i32) {
    %c0_i32 = arith.constant 0 : i32
    %c0_i32_0 = arith.constant 0 : i32
    %c0_i32_1 = arith.constant 0 : i32
    %c0_i32_2 = arith.constant 0 : i32
    return %arg0, %c0_i32, %c0_i32_0, %c0_i32_1 : i32, i32, i32, i32
  }
  func.func @transform_1(%arg0: i32) -> (i32, i32, i32, i32) {
    %c0_i32 = arith.constant 0 : i32
    %c0_i32_0 = arith.constant 0 : i32
    %c0_i32_1 = arith.constant 0 : i32
    %c0_i32_2 = arith.constant 0 : i32
    return %arg0, %c0_i32, %c0_i32_0, %c0_i32_1 : i32, i32, i32, i32
  }
  func.func @transform_2(%arg0: i32) -> (i32, i32) {
    %c0_i32 = arith.constant 0 : i32
    %c0_i32_0 = arith.constant 0 : i32
    %c0_i32_1 = arith.constant 0 : i32
    return %c0_i32, %c0_i32_0 : i32, i32
  }
  func.func @transform_3(%arg0: i32) -> (i32, i32) {
    %c0_i32 = arith.constant 0 : i32
    %c0_i32_0 = arith.constant 0 : i32
    %c0_i32_1 = arith.constant 0 : i32
    return %c0_i32, %c0_i32_0 : i32, i32
  }
  func.func @transform_4(%arg0: i32) -> (i32, i32) {
    %c0_i32 = arith.constant 0 : i32
    %c0_i32_0 = arith.constant 0 : i32
    %c0_i32_1 = arith.constant 0 : i32
    return %c0_i32, %c0_i32_0 : i32, i32
  }
  func.func @transform_5(%arg0: i32) -> (i32, i32) {
    %c0_i32 = arith.constant 0 : i32
    %c0_i32_0 = arith.constant 0 : i32
    %c0_i32_1 = arith.constant 0 : i32
    return %c0_i32, %c0_i32_0 : i32, i32
  }
  func.func @transform_6(%arg0: i32) -> (i32, i32) {
    %c0_i32 = arith.constant 0 : i32
    %c0_i32_0 = arith.constant 0 : i32
    %c0_i32_1 = arith.constant 0 : i32
    return %c0_i32, %c0_i32_0 : i32, i32
  }
  func.func @transform_7(%arg0: i32) -> (i32, i32) {
    %c0_i32 = arith.constant 0 : i32
    %c0_i32_0 = arith.constant 0 : i32
    %c0_i32_1 = arith.constant 0 : i32
    return %c0_i32, %c0_i32_0 : i32, i32
  }
  func.func @transform_8(%arg0: i32) -> (i32, i32, i32, i32) {
    %c0_i32 = arith.constant 0 : i32
    %c0_i32_0 = arith.constant 0 : i32
    %c0_i32_1 = arith.constant 0 : i32
    %c0_i32_2 = arith.constant 0 : i32
    return %arg0, %c0_i32, %c0_i32_0, %c0_i32_1 : i32, i32, i32, i32
  }
}

</mosaic_0001>

<bundles_post_ra>
// kernel: tpu_custom_call.1
= control target key start
LH: loop header
LB: loop body
LE: loop exit
PB: predicated region body
PF: predicated region fallthrough
CT: control target
= control target key end

     0   :  { %13 = vsyncpa [#allocation3], 0  ;;  %s707_s0 = inlined_call_operand.hbm [shape: f32[2,3,16,16], index: 0, kind: input, shape index: {}]   ;;  %s708_s1 = inlined_call_operand.hbm [shape: f32[2,3,16,16], index: 1, kind: input, shape index: {}]   ;;  %s709_s2 = inlined_call_operand.vmem [shape: f32[16,4], index: 2, kind: input, shape index: {}]   ;;  %s710_s3 = inlined_call_operand.vmem [shape: f32[4,16], index: 3, kind: input, shape index: {}]   ;;  %s711_s4 = inlined_call_operand.vmem [shape: f32[4,4], index: 4, kind: input, shape index: {}]   ;;  %s712_s5 = inlined_call_operand.vmem [shape: f32[4,4], index: 5, kind: input, shape index: {}]   ;;  %s713_s6 = inlined_call_operand.vmem [shape: f32[4,4], index: 6, kind: input, shape index: {}]   ;;  %s714_s7 = inlined_call_operand.vmem [shape: f32[4,4], index: 7, kind: input, shape index: {}]   ;;  %s715_s8 = inlined_call_operand.hbm [shape: f32[2,1,4,4], index: 8, kind: output, shape index: {}]  }
   0x1   :  { %14 = vsyncpa [#allocation6], 0 }
   0x2   :  { %15 = vsyncpa [#allocation4], 0  ;;  %s20_s29 = sshll.u32 %s707_s0, 4  ;;  %s580_s30 = smov [#allocation2]   ;;  %s21_s29 = int_to_ptr.hbm [resolvable:$true] %s20_s29 }
   0x3   :  { %s22_s9 = sshll.u32 %s580_s30, 4  ;;  %s33_s12 = sshll.u32 %s708_s1, 4  ;;  %s23_s9 = int_to_ptr.vmem [resolvable:$true] %s22_s9  ;;  %s34_s12 = int_to_ptr.hbm [resolvable:$true] %s33_s12 }
   0x4   :  { %s581_s13 = smov 128   ;;  %s582_s14 = smov 8  }
   0x5   :  { %28 = dma.hbm_to_vmem [thread:$0]  %s21_s29, 1536, %s23_s9, [#allocation3], %s581_s13, %s581_s13, %s582_s14  }
   0x6   :  { %s583_s15 = smov [#allocation5]  }
   0x7   :  { %s35_s16 = sshll.u32 %s583_s15, 4  ;;  %s36_s16 = int_to_ptr.vmem [resolvable:$true] %s35_s16 }
   0x8   :  { %41 = dma.hbm_to_vmem [thread:$0]  %s34_s12, 1536, %s36_s16, [#allocation6], %s581_s13, %s581_s13, %s582_s14  }
   0x9   :  { %574 = dma.done.wait [#allocation3], 1536  }
   0xa   :  { %575 = vsyncadd [#allocation3], 4294965760 }
   0xb   :  { %576 = dma.done.wait [#allocation6], 1536  }
   0xc   :  { %577 = vsyncadd [#allocation6], 4294965760  ;;  %v584_v0 = vmov 3.0   ;;  %v642_v2 = vld [vmem:[%s709_s2 + $0x8] sm:$0xff]  ;;  %v647_v3 = vld [vmem:[%s709_s2] sm:$0xff]  ;;  %vm87_vm0 = vcmask 130048  }
   0xd   :  { %500 = vrcp.f32 %v584_v0  ;;  %v69_v4 = vld [vmem:[#allocation2] sm:$0xff]  ;;  %127 = vmatpush.msra.mxu0 %v642_v2  ;;  %v71_v5 = vld [vmem:[#allocation2 + $0x10] sm:$0xff]  ;;  %v70_v12 = vld [vmem:[#allocation2 + $0x8] sm:$0xff]  ;;  %vm163_vm2 = vcmask 1043456   ;;  %vm159_vm3 = vcmask 31744   ;;  %vm269_vm4 = vcmask 27648  }
   0xe   :  { %v73_v6 = vld [vmem:[#allocation2 + $0x20] sm:$0xff]  ;;  %v77_v9 = vld [vmem:[#allocation5 + $0x10] sm:$0xff]  ;;  %v72_v16 = vld [vmem:[#allocation2 + $0x18] sm:$0xff]  ;;  %s456_s27 = sshll.u32 %s715_s8, 4  ;;  %s586_s28 = smov 64   ;;  %s457_s27 = int_to_ptr.hbm [resolvable:$true] %s456_s27 }
   0xf   :  { %v75_v7 = vld [vmem:[#allocation5] sm:$0xff]  ;;  %128 = vmatpush.msra.mxu0 %v647_v3  ;;  %v83_v13 = vsub.f32 %v71_v5, %v77_v9  ;;  %v74_v17 = vld [vmem:[#allocation2 + $0x28] sm:$0xff]  ;;  %v78_v20 = vld [vmem:[#allocation5 + $0x18] sm:$0xff]  ;;  %s587_s29 = smov 4  }
  0x10   :  { %v79_v10 = vld [vmem:[#allocation5 + $0x20] sm:$0xff]  ;;  %v81_v11 = vsub.f32 %v69_v4, %v75_v7  ;;  %v76_v18 = vld [vmem:[#allocation5 + $0x8] sm:$0xff]  ;;  %v84_v26 = vsub.f32 %v72_v16, %v78_v20  ;;  %v272_v39 = vld [vmem:[#allocation2 + $0x30] sm:$0xff] }
  0x11   :  { %v85_v14 = vsub.f32 %v73_v6, %v79_v10  ;;  %v80_v21 = vld [vmem:[#allocation5 + $0x28] sm:$0xff]  ;;  %v82_v22 = vsub.f32 %v70_v12, %v76_v18  ;;  %v89_v23 = vsel %vm87_vm0, %v83_v13, 0.0  ;;  %v274_v40 = vld [vmem:[#allocation2 + $0x40] sm:$0xff]  ;;  %v279_v41 = vld [vmem:[#allocation5 + $0x30] sm:$0xff] }
  0x12   :  { %v88_v19 = vsel %vm87_vm0, %v81_v11, 0.0  ;;  %v86_v28 = vsub.f32 %v74_v17, %v80_v21  ;;  %v94_v31 = vsel %vm87_vm0, %v84_v26, 0.0  ;;  %v281_v42 = vld [vmem:[#allocation5 + $0x40] sm:$0xff]  ;;  %v285_v44 = vsub.f32 %v272_v39, %v279_v41  ;;  %v276_v46 = vld [vmem:[#allocation2 + $0x50] sm:$0xff]  ;;  %v273_v51 = vld [vmem:[#allocation2 + $0x38] sm:$0xff] }
  0x13   :  { %v501_v1 = vpop.eup %500  ;;  %v91_v24 = vsel %vm87_vm0, %v85_v14, 0.0  ;;  %v90_v27 = vadd.f32 %v89_v23, %v88_v19  ;;  %v93_v29 = vsel %vm87_vm0, %v82_v22, 0.0  ;;  %v287_v45 = vsub.f32 %v274_v40, %v281_v42  ;;  %v283_v47 = vld [vmem:[#allocation5 + $0x50] sm:$0xff]  ;;  %v275_v52 = vld [vmem:[#allocation2 + $0x48] sm:$0xff]  ;;  %v280_v53 = vld [vmem:[#allocation5 + $0x38] sm:$0xff] }
  0x14   :  { %v99_v8 = vmul.f32 3.0, %v501_v1  ;;  %vm103_vm1 = vweird.f32 %v501_v1  ;;  %v95_v33 = vadd.f32 %v94_v31, %v93_v29  ;;  %v96_v35 = vsel %vm87_vm0, %v86_v28, 0.0  ;;  %v282_v54 = vld [vmem:[#allocation5 + $0x48] sm:$0xff]  ;;  %v64_v57 = vld [vmem:[%s710_s3] sm:$0xf]  ;;  %v277_v61 = vld [vmem:[#allocation2 + $0x58] sm:$0xff] }
  0x15   :  { %v92_v32 = vadd.f32 %v91_v24, %v90_v27  ;;  %v289_v48 = vsub.f32 %v276_v46, %v283_v47  ;;  %v291_v49 = vsel %vm87_vm0, %v285_v44, 0.0  ;;  %v292_v50 = vsel %vm87_vm0, %v287_v45, 0.0  ;;  %v284_v62 = vld [vmem:[#allocation5 + $0x58] sm:$0xff]  ;;  %v66_v10 = vld [vmem:[%s712_s5] sm:$0xf] }
  0x16   :  { %v100_v15 = vsub.f32 1.0, %v99_v8  ;;  %v97_v37 = vadd.f32 %v96_v35, %v95_v33  ;;  %v293_v56 = vadd.f32 %v292_v50, %v291_v49  ;;  %v286_v59 = vsub.f32 %v273_v51, %v280_v53  ;;  %475 = vmatpush.msk.msra.mxu3 %vm163_vm2, %v66_v10  ;;  %486 = vmatpush.msk.msrb.mxu0 %vm163_vm2, %v66_v10  ;;  %v67_v11 = vld [vmem:[%s713_s6] sm:$0xf]  ;;  %s585_s6 = smov [#allocation7]  }
  0x17   :  { %v294_v58 = vsel %vm87_vm0, %v289_v48, 0.0  ;;  %v288_v60 = vsub.f32 %v275_v52, %v282_v54  ;;  %v290_v0 = vsub.f32 %v277_v61, %v284_v62  ;;  %v68_v12 = vld [vmem:[%s714_s7] sm:$0xf]  ;;  %s454_s7 = sshll.u32 %s585_s6, 4  ;;  %s455_s7 = int_to_ptr.vmem [resolvable:$true] %s454_s7 }
  0x18   :  { %v101_v25 = vmul.f32 %v501_v1, %v100_v15  ;;  %v295_v63 = vadd.f32 %v294_v58, %v293_v56 }
  0x19   :  { %v297_v4 = vsel %vm87_vm0, %v288_v60, 0.0  ;;  %v299_v7 = vsel %vm87_vm0, %v290_v0, 0.0 }
  0x1a   :  { %v102_v30 = vadd.f32 %v501_v1, %v101_v25 }
  0x1c   :  { %v104_v34 = vsel %vm103_vm1, %v501_v1, %v102_v30  ;;  %v296_v1 = vsel %vm87_vm0, %v286_v59, 0.0 }
  0x1d   :  { %v105_v36 = vmul.f32 %v104_v34, %v92_v32  ;;  %v106_v38 = vmul.f32 %v104_v34, %v97_v37  ;;  %v301_v5 = vmul.f32 %v295_v63, %v104_v34  ;;  %v298_v6 = vadd.f32 %v297_v4, %v296_v1 }
  0x1f   :  { %470 = vmatmul.msk.f32.vlgmr.msra.gmra.mxu0 %vm87_vm0, %v105_v36  ;;  %v300_v8 = vadd.f32 %v299_v7, %v298_v6 }
  0x21   :  { %v302_v9 = vmul.f32 %v300_v8, %v104_v34 }
  0x27   :  { %471 = vmatmul.msk.f32.gmra.mxu0 %vm87_vm0, %v106_v38 }
  0x9c   :  { %v130_v43 = vpop.f32.mrf.mxu0 }
  0xa4   :  { %v133_v55 = vpop.f32.mrf.mxu0 }
  0xa5   :  { %153 = vmatpush.msra.mxu1 %v133_v55 }
  0xa7   :  { %154 = vmatpush.msra.mxu1 %v130_v43 }
  0xa8   :  { %472 = vmatmul.msk.f32.vlgmr.msra.gmra.mxu1 %vm87_vm0, %v64_v57 }
  0xa9   :  { %323 = vmatpush.msrb.mxu1 %v642_v2  ;;  %v65_v2 = vld [vmem:[%s711_s4] sm:$0xf] }
  0xaa   :  { %473 = vmatpush.msk.msra.mxu2 %vm163_vm2, %v65_v2 }
  0xab   :  { %324 = vmatpush.msrb.mxu1 %v647_v3 }
  0xb0   :  { %481 = vmatmul.msk.f32.vlgmr.msrb.gmra.mxu1 %vm87_vm0, %v301_v5 }
  0xb8   :  { %482 = vmatmul.msk.f32.gmra.mxu1 %vm87_vm0, %v302_v9 }
 0x125   :  { %v156_v3 = vpop.f32.mrf.mxu1 }
 0x126   :  { %474 = vmatmul.msk.f32.vlgmr.msra.gmra.mxu2 %vm159_vm3, %v156_v3  ;;  %476 = vmatmul.msk.f32.vlgmr.msra.gmra.mxu3 %vm159_vm3, %v156_v3 }
 0x127   :  { %477 = vmatpush.msk.msrb.mxu2 %vm163_vm2, %v156_v3  ;;  %479 = vmatpush.msk.msrb.mxu3 %vm163_vm2, %v156_v3 }
 0x129   :  { %484 = vmatpush.msk.msra.mxu3 %vm163_vm2, %v65_v2 }
 0x12d   :  { %v326_v13 = vpop.f32.mrf.mxu1 }
 0x12e   :  { %478 = vmatmul.msk.f32.vlgmr.msrb.gmra.mxu2 %vm159_vm3, %v67_v11  ;;  %480 = vmatmul.msk.f32.vlgmr.msrb.gmra.mxu3 %vm159_vm3, %v68_v12 }
 0x135   :  { %v329_v14 = vpop.f32.mrf.mxu1 }
 0x136   :  { %346 = vmatpush.msra.mxu2 %v329_v14 }
 0x138   :  { %347 = vmatpush.msra.mxu2 %v326_v13 }
 0x139   :  { %483 = vmatmul.msk.f32.vlgmr.msra.gmra.mxu2 %vm87_vm0, %v64_v57 }
 0x1a9   :  { %v184_v15 = vpop.f32.mrf.mxu2  ;;  %v208_v16 = vpop.f32.mrf.mxu3 }
 0x1aa   :  { %v187_v17 = vsub.f32 %v156_v3, %v184_v15  ;;  %v211_v18 = vsub.f32 %v156_v3, %v208_v16 }
 0x1ac   :  { %v262_v19 = vmul.f32 %v187_v17, %v187_v17  ;;  %v263_v20 = vmul.f32 %v211_v18, %v211_v18 }
 0x1ae   :  { %v264_v25 = vadd.f32 %v263_v20, %v262_v19 }
 0x1b1   :  { %v234_v21 = vpop.f32.mrf.mxu2  ;;  %v258_v22 = vpop.f32.mrf.mxu3 }
 0x1b2   :  { %v237_v23 = vsub.f32 %v156_v3, %v234_v21  ;;  %v261_v24 = vsub.f32 %v156_v3, %v258_v22 }
 0x1b4   :  { %v265_v26 = vmul.f32 %v237_v23, %v237_v23  ;;  %v267_v28 = vmul.f32 %v261_v24, %v261_v24 }
 0x1b6   :  { %v266_v27 = vadd.f32 %v265_v26, %v264_v25 }
 0x1b8   :  { %v268_v29 = vadd.f32 %v267_v28, %v266_v27 }
 0x1ba   :  { %270 = vst.msk [vmem:[#allocation7] sm:$0xf] %vm269_vm4, %v268_v29 }
 0x1bc   :  { %v349_v30 = vpop.f32.mrf.mxu2 }
 0x1bd   :  { %485 = vmatmul.msk.f32.vlgmr.msra.gmra.mxu3 %vm159_vm3, %v349_v30  ;;  %487 = vmatmul.msk.f32.vlgmr.msrb.gmra.mxu0 %vm159_vm3, %v349_v30 }
 0x1be   :  { %488 = vmatpush.msk.msrb.mxu2 %vm163_vm2, %v349_v30  ;;  %490 = vmatpush.msk.msrb.mxu3 %vm163_vm2, %v349_v30 }
 0x1bf   :  { %489 = vmatmul.msk.f32.vlgmr.msrb.gmra.mxu2 %vm159_vm3, %v67_v11 }
 0x1c5   :  { %491 = vmatmul.msk.f32.vlgmr.msrb.gmra.mxu3 %vm159_vm3, %v68_v12 }
 0x23a   :  { %v393_v31 = vpop.f32.mrf.mxu0 }
 0x23b   :  { %v396_v33 = vsub.f32 %v349_v30, %v393_v31 }
 0x23d   :  { %v442_v38 = vmul.f32 %v396_v33, %v396_v33 }
 0x240   :  { %v372_v32 = vpop.f32.mrf.mxu3 }
 0x241   :  { %v375_v34 = vsub.f32 %v349_v30, %v372_v32 }
 0x242   :  { %v416_v35 = vpop.f32.mrf.mxu2 }
 0x243   :  { %v441_v36 = vmul.f32 %v375_v34, %v375_v34  ;;  %v419_v37 = vsub.f32 %v349_v30, %v416_v35 }
 0x245   :  { %v443_v39 = vadd.f32 %v442_v38, %v441_v36  ;;  %v444_v40 = vmul.f32 %v419_v37, %v419_v37 }
 0x247   :  { %v445_v43 = vadd.f32 %v444_v40, %v443_v39 }
 0x248   :  { %v437_v41 = vpop.f32.mrf.mxu3 }
 0x249   :  { %v440_v42 = vsub.f32 %v349_v30, %v437_v41 }
 0x24b   :  { %v446_v44 = vmul.f32 %v440_v42, %v440_v42 }
 0x24d   :  { %v447_v45 = vadd.f32 %v446_v44, %v445_v43 }
 0x24f   :  { %449 = vst.msk [vmem:[#allocation7 + $0x4] sm:$0xf] %vm269_vm4, %v447_v45 }
 0x250   :  { %462 = dma.vmem_to_hbm [thread:$0]  %s455_s7, 128, %s457_s27, [#allocation4], %s586_s28, %s586_s28, %s587_s29  }
 0x251   :  { %578 = dma.done.wait [#allocation4], 128  }
 0x252   :  { %579 = vsyncadd [#allocation4], 4294967168 }
 0x253   :  { %467 = vsyncpa [#allocation3], 1 }
 0x254   :  { %468 = vsyncpa [#allocation6], 1 }
 0x255   :  { %469 = vsyncpa [#allocation4], 1 }

</bundles_post_ra>
